<compile_context>
chip_gen: v5e
topology: v5e:2x2
jax: 0.10.0
libtpu: 0.0.40
codegen_flags: <defaults>
</compile_context>

<pallas_src>
import math

import jax
import jax.numpy as jnp
from jax.experimental import pallas as pl
from jax.experimental.pallas import tpu as pltpu


# ----------------------------------------------------------------------------
# Config (mirrors the fields the PyTorch module reads)
# ----------------------------------------------------------------------------
class Config:
    hidden_size = 32
    hidden_size_mlp = [64, 32]
    activation_mlp = "relu"
    dropout_mlp = 0.1  # identity at inference


def _activation(name):
    if name == "relu":
        return lambda x: jnp.maximum(x, 0.0)
    if name == "elu":
        return lambda x: jnp.where(x > 0, x, jnp.expm1(x))
    if name == "tanh":
        return jnp.tanh
    if name == "sigmoid":
        return jax.nn.sigmoid
    raise ValueError(name)


def _round_up(n, m):
    return (n + m - 1) // m * m


# ----------------------------------------------------------------------------
# One-time parameter folding (hoisted out of the per-forward path)
# ----------------------------------------------------------------------------
def fold_params(params, compute_dtype=jnp.bfloat16):
    """Fold weight_norm (dim=None) into effective weights.

    Hidden-layer weights are kept in (out, in) orientation for the transposed
    (batch-in-lanes) matmuls and cast to `compute_dtype` (MXU operand dtype).
    Biases are stored as f32 (out, 1) columns.  The final 1-output layer is
    stored as an f32 (in, 1) column for the VPU/XLU projection.
    Call once per parameter update, NOT once per forward.
    """
    folded = []
    n = len(params)
    for li, (v, g, b) in enumerate(params):
        # weight_norm with dim=None: scalar g, Frobenius norm over the whole V
        w_eff = (g * v / jnp.linalg.norm(v)).astype(jnp.float32)  # (out, in)
        if li < n - 1:
            folded.append((w_eff.astype(compute_dtype),            # (out, in)
                           b.reshape(-1, 1).astype(jnp.float32)))  # (out, 1)
        else:
            folded.append((w_eff.reshape(-1, 1).astype(jnp.float32),  # (in, 1)
                           b.reshape(1, 1).astype(jnp.float32)))      # (1, 1)
    return folded


# ----------------------------------------------------------------------------
# Pallas kernel: whole MLP hot path for one batch tile (batch on the lane axis)
# ----------------------------------------------------------------------------
def _make_mlp_kernel(act_fn, n_hidden_layers):
    # Refs arrive as: xT, (w, b_col) * n_hidden_layers, (w_last_col, b_last), out
    def kernel(*refs):
        x_ref = refs[0]
        o_ref = refs[-1]
        wb = refs[1:-1]

        # xT block: (H, TILE_B) with batch in lanes -> lane-dense loads.
        h = x_ref[...]

        # Hidden layers: MXU matmul (bf16/f32 operands, f32 accumulate),
        # then bias + activation in f32 on fully lane-utilized vregs.
        for li in range(n_hidden_layers):
            w = wb[2 * li][...]          # (d_out, d_in)
            b = wb[2 * li + 1][...]      # (d_out, 1) f32, lane-broadcast
            h = jnp.dot(w, h, preferred_element_type=jnp.float32) + b
            h = act_fn(h)                # dropout == identity (inference)

        # Final 1-wide projection on the VPU (mul) + XLU (sublane reduce):
        # frees the MXU slot and directly produces the lane-dense output row.
        w_col = wb[-2][...]              # (d_last, 1) f32
        b_last = wb[-1][...]             # (1, 1) f32
        out = jnp.sum(h * w_col, axis=0, keepdims=True) + b_last  # (1, TILE_B)
        o_ref[...] = out.astype(o_ref.dtype)

    return kernel


# ----------------------------------------------------------------------------
# Forward wrapper
# ----------------------------------------------------------------------------
DEFAULT_TILE_B = 8192  # batch rows (lanes) per grid step


def _choose_tile_b(batch, tile_b):
    """Lane-aligned tile, capped so the grid has >= 2 steps when possible."""
    tile_b = max(128, _round_up(int(tile_b), 128))
    tile_b = min(tile_b, _round_up(batch, 128))
    # Keep >= 2 grid steps whenever the batch allows it so the "parallel"
    # batch axis can shard across both TensorCores on v7x.
    if _round_up(batch, 128) >= 2 * 128 and pl.cdiv(batch, tile_b) < 2:
        tile_b = max(128, _round_up(-(-batch // 2), 128))
    return tile_b


def baseprediction_forward(x, folded_params, config, tile_b=DEFAULT_TILE_B):
    """x: (B, hidden_size) float32.  Returns a 1-tuple (y,) with y: (B, 1)."""
    act_fn = _activation(config.activation_mlp)
    n_hidden = len(config.hidden_size_mlp)
    assert len(folded_params) == n_hidden + 1

    B, H = x.shape
    assert H == config.hidden_size

    TILE_B = _choose_tile_b(B, tile_b)
    B_pad = _round_up(B, TILE_B)

    compute_dtype = folded_params[0][0].dtype

    # Layout plumbing (one fused XLA pass): pad the batch, transpose so the
    # batch sits on the 128-lane axis, and cast to the MXU operand dtype.
    xT = jnp.pad(x, ((0, B_pad - B), (0, 0))).T.astype(compute_dtype)  # (H, B_pad)

    grid = (B_pad // TILE_B,)

    kernel_args = [xT]
    in_specs = [pl.BlockSpec((H, TILE_B), lambda i: (0, i))]
    for (w, b_col) in folded_params:
        kernel_args.append(w)
        kernel_args.append(b_col)
        # Grid-invariant index_map -> DMA'd into VMEM once, resident across
        # all batch tiles (no per-step weight re-fetch).
        in_specs.append(pl.BlockSpec(w.shape, lambda i: (0, 0)))
        in_specs.append(pl.BlockSpec(b_col.shape, lambda i: (0, 0)))

    sizes = [H] + list(config.hidden_size_mlp) + [1]
    flops = 2 * B_pad * sum(a * b for a, b in zip(sizes[:-1], sizes[1:]))
    transcendentals = (0 if config.activation_mlp == "relu"
                       else B_pad * sum(config.hidden_size_mlp))
    bytes_accessed = (
        xT.size * jnp.dtype(compute_dtype).itemsize
        + sum(w.size * jnp.dtype(w.dtype).itemsize + b.size * 4
              for w, b in folded_params)
        + B_pad * 4
    )

    y_row = pl.pallas_call(
        _make_mlp_kernel(act_fn, n_hidden),
        out_shape=jax.ShapeDtypeStruct((1, B_pad), jnp.float32),
        grid=grid,
        in_specs=in_specs,
        # Lane-dense output slab: full vsts instead of per-vreg masked stores.
        out_specs=pl.BlockSpec((1, TILE_B), lambda i: (0, i)),
        compiler_params=pltpu.CompilerParams(
            # Batch tiles are independent: shard across both TCs on v7x.
            dimension_semantics=("parallel",),
            vmem_limit_bytes=32 * 1024 * 1024,
        ),
        cost_estimate=pl.CostEstimate(
            flops=flops,
            transcendentals=transcendentals,
            bytes_accessed=bytes_accessed,
        ),
    )(*kernel_args)

    y = y_row.reshape(B_pad, 1)[:B]

    # TODO(synk): dropout is implemented as identity (inference mode); a
    # training-mode mask would need pltpu.prng_seed / prng_random_bits in-kernel.
    return (y,)


# ----------------------------------------------------------------------------
# Deterministic parameter construction (synthetic, matches module shapes)
# ----------------------------------------------------------------------------
def init_params(key, config):
    sizes = [config.hidden_size] + list(config.hidden_size_mlp) + [1]
    params = []
    for i in range(len(sizes) - 1):
        fan_in, fan_out = sizes[i], sizes[i + 1]
        key, kv, kb, kg = jax.random.split(key, 4)
        bound = 1.0 / math.sqrt(fan_in)
        v = jax.random.uniform(kv, (fan_out, fan_in), jnp.float32, -bound, bound)
        b = jax.random.uniform(kb, (fan_out,), jnp.float32, -bound, bound)
        # weight_norm init sets g = ||v||; perturb slightly so g matters
        g = jnp.linalg.norm(v) * (1.0 + 0.1 * jax.random.uniform(kg, ()))
        params.append((v, g, b))
    return params


# ----------------------------------------------------------------------------
# Pure-JAX reference for correctness checking
# ----------------------------------------------------------------------------
def reference_forward(x, params, config):
    act_fn = _activation(config.activation_mlp)
    h = x
    n_hidden = len(config.hidden_size_mlp)
    for li, (v, g, b) in enumerate(params):
        w = g * v / jnp.linalg.norm(v)
        h = h @ w.T + b
        if li < n_hidden:
            h = act_fn(h)
    return (h,)


if __name__ == "__main__":
    cfg = Config()
    key = jax.random.PRNGKey(0)
    key, kx = jax.random.split(key)

    params = init_params(key, cfg)

    # --- f32 path, small single-tile shape (tight tolerance) ---
    folded_f32 = jax.block_until_ready(fold_params(params, compute_dtype=jnp.float32))
    B = 8
    x = jax.random.normal(kx, (B, cfg.hidden_size), dtype=jnp.float32)
    (y,) = baseprediction_forward(x, folded_f32, cfg)
    y = jax.block_until_ready(y)
    (y_ref,) = reference_forward(x, params, cfg)
    assert y.shape == (B, 1), y.shape
    assert jnp.allclose(y, y_ref, atol=1e-4, rtol=1e-4), (
        float(jnp.max(jnp.abs(y - y_ref)))
    )

    # --- bf16 MXU-operand path, multi-tile grid + batch padding
    #     (B not a multiple of the tile; looser tolerance for bf16 operands) ---
    folded_bf16 = jax.block_until_ready(fold_params(params, compute_dtype=jnp.bfloat16))
    B2 = 1000
    key, kx2 = jax.random.split(key)
    x2 = jax.random.normal(kx2, (B2, cfg.hidden_size), dtype=jnp.float32)
    (y2,) = baseprediction_forward(x2, folded_bf16, cfg, tile_b=256)  # grid = (4,)
    y2 = jax.block_until_ready(y2)
    (y2_ref,) = reference_forward(x2, params, cfg)
    assert y2.shape == (B2, 1), y2.shape
    assert jnp.allclose(y2, y2_ref, atol=2e-2, rtol=2e-2), (
        float(jnp.max(jnp.abs(y2 - y2_ref)))
    )

    print("KERNEL_OK")
</pallas_src>

<mosaic_0001>
module attributes {stable_mosaic.version = 11 : i64} {
  func.func @kernel(%arg0: i32, %arg1: memref<32x128xf32, #tpu.memory_space<vmem>>, %arg2: memref<64x32xf32, #tpu.memory_space<vmem>>, %arg3: memref<64x1xf32, #tpu.memory_space<vmem>>, %arg4: memref<32x64xf32, #tpu.memory_space<vmem>>, %arg5: memref<32x1xf32, #tpu.memory_space<vmem>>, %arg6: memref<32x1xf32, #tpu.memory_space<vmem>>, %arg7: memref<1x1xf32, #tpu.memory_space<vmem>>, %arg8: memref<1x128xf32, #tpu.memory_space<vmem>>) attributes {dimension_semantics = [#tpu.dimension_semantics<parallel>], iteration_bounds = array<i64: 1>, scalar_prefetch = 0 : i64, scratch_operands = 0 : i64, tpu.core_type = #tpu.core_type<tc>, window_params = [{transform_indices = @transform_0, window_bounds = array<i64: 32, 128>}, {pipeline_mode = #tpu.pipeline_mode<synchronous>, transform_indices = @transform_1, window_bounds = array<i64: 64, 32>}, {pipeline_mode = #tpu.pipeline_mode<synchronous>, transform_indices = @transform_2, window_bounds = array<i64: 64, 1>}, {pipeline_mode = #tpu.pipeline_mode<synchronous>, transform_indices = @transform_3, window_bounds = array<i64: 32, 64>}, {pipeline_mode = #tpu.pipeline_mode<synchronous>, transform_indices = @transform_4, window_bounds = array<i64: 32, 1>}, {pipeline_mode = #tpu.pipeline_mode<synchronous>, transform_indices = @transform_5, window_bounds = array<i64: 32, 1>}, {pipeline_mode = #tpu.pipeline_mode<synchronous>, transform_indices = @transform_6, window_bounds = array<i64: 1, 1>}, {transform_indices = @transform_7, window_bounds = array<i64: 1, 128>}]} {
    %c0 = arith.constant 0 : index
    %c0_0 = arith.constant 0 : index
    %0 = vector.load %arg1[%c0, %c0_0] : memref<32x128xf32, #tpu.memory_space<vmem>>, vector<32x128xf32>
    %c0_1 = arith.constant 0 : index
    %c0_2 = arith.constant 0 : index
    %1 = vector.load %arg2[%c0_1, %c0_2] : memref<64x32xf32, #tpu.memory_space<vmem>>, vector<64x32xf32>
    %c0_3 = arith.constant 0 : index
    %c0_4 = arith.constant 0 : index
    %2 = vector.load %arg3[%c0_3, %c0_4] : memref<64x1xf32, #tpu.memory_space<vmem>>, vector<64x1xf32>
    %cst = arith.constant dense<0.000000e+00> : vector<64x128xf32>
    %3 = tpu.matmul %1, %0, %cst {dimension_numbers = #tpu.dot_dimension_numbers<[1], [0], [0], [1], [0, 0, 1, 1], [], []>} : vector<64x32xf32>, vector<32x128xf32>, vector<64x128xf32> -> vector<64x128xf32>
    %4 = vector.broadcast %2 : vector<64x1xf32> to vector<64x128xf32>
    %5 = arith.addf %3, %4 : vector<64x128xf32>
    %cst_5 = arith.constant 0.000000e+00 : f32
    %6 = vector.broadcast %cst_5 : f32 to vector<64x128xf32>
    %7 = arith.maximumf %5, %6 : vector<64x128xf32>
    %c0_6 = arith.constant 0 : index
    %c0_7 = arith.constant 0 : index
    %8 = vector.load %arg4[%c0_6, %c0_7] : memref<32x64xf32, #tpu.memory_space<vmem>>, vector<32x64xf32>
    %c0_8 = arith.constant 0 : index
    %c0_9 = arith.constant 0 : index
    %9 = vector.load %arg5[%c0_8, %c0_9] : memref<32x1xf32, #tpu.memory_space<vmem>>, vector<32x1xf32>
    %cst_10 = arith.constant dense<0.000000e+00> : vector<32x128xf32>
    %10 = tpu.matmul %8, %7, %cst_10 {dimension_numbers = #tpu.dot_dimension_numbers<[1], [0], [0], [1], [0, 0, 1, 1], [], []>} : vector<32x64xf32>, vector<64x128xf32>, vector<32x128xf32> -> vector<32x128xf32>
    %11 = vector.broadcast %9 : vector<32x1xf32> to vector<32x128xf32>
    %12 = arith.addf %10, %11 : vector<32x128xf32>
    %cst_11 = arith.constant 0.000000e+00 : f32
    %13 = vector.broadcast %cst_11 : f32 to vector<32x128xf32>
    %14 = arith.maximumf %12, %13 : vector<32x128xf32>
    %c0_12 = arith.constant 0 : index
    %c0_13 = arith.constant 0 : index
    %15 = vector.load %arg6[%c0_12, %c0_13] : memref<32x1xf32, #tpu.memory_space<vmem>>, vector<32x1xf32>
    %c0_14 = arith.constant 0 : index
    %c0_15 = arith.constant 0 : index
    %16 = vector.load %arg7[%c0_14, %c0_15] : memref<1x1xf32, #tpu.memory_space<vmem>>, vector<1x1xf32>
    %17 = vector.broadcast %15 : vector<32x1xf32> to vector<32x128xf32>
    %18 = arith.mulf %14, %17 : vector<32x128xf32>
    %cst_16 = arith.constant dense<0.000000e+00> : vector<128xf32>
    %19 = vector.multi_reduction <add>, %18, %cst_16 [0] : vector<32x128xf32> to vector<128xf32>
    %20 = vector.shape_cast %19 : vector<128xf32> to vector<1x128xf32>
    %21 = vector.broadcast %16 : vector<1x1xf32> to vector<1x128xf32>
    %22 = arith.addf %20, %21 : vector<1x128xf32>
    %c0_17 = arith.constant 0 : index
    %c0_18 = arith.constant 0 : index
    %23 = vector.load %arg8[%c0_17, %c0_18] : memref<1x128xf32, #tpu.memory_space<vmem>>, vector<1x128xf32>
    tpu.vector_store %arg8[%c0_17, %c0_18], %22 {strides = array<i32>} : memref<1x128xf32, #tpu.memory_space<vmem>>, vector<1x128xf32>,
    return
  }
  func.func @transform_0(%arg0: i32) -> (i32, i32) {
    %c0_i32 = arith.constant 0 : i32
    %c0_i32_0 = arith.constant 0 : i32
    return %c0_i32, %arg0 : i32, i32
  }
  func.func @transform_1(%arg0: i32) -> (i32, i32) {
    %c0_i32 = arith.constant 0 : i32
    %c0_i32_0 = arith.constant 0 : i32
    %c0_i32_1 = arith.constant 0 : i32
    return %c0_i32, %c0_i32_0 : i32, i32
  }
  func.func @transform_2(%arg0: i32) -> (i32, i32) {
    %c0_i32 = arith.constant 0 : i32
    %c0_i32_0 = arith.constant 0 : i32
    %c0_i32_1 = arith.constant 0 : i32
    return %c0_i32, %c0_i32_0 : i32, i32
  }
  func.func @transform_3(%arg0: i32) -> (i32, i32) {
    %c0_i32 = arith.constant 0 : i32
    %c0_i32_0 = arith.constant 0 : i32
    %c0_i32_1 = arith.constant 0 : i32
    return %c0_i32, %c0_i32_0 : i32, i32
  }
  func.func @transform_4(%arg0: i32) -> (i32, i32) {
    %c0_i32 = arith.constant 0 : i32
    %c0_i32_0 = arith.constant 0 : i32
    %c0_i32_1 = arith.constant 0 : i32
    return %c0_i32, %c0_i32_0 : i32, i32
  }
  func.func @transform_5(%arg0: i32) -> (i32, i32) {
    %c0_i32 = arith.constant 0 : i32
    %c0_i32_0 = arith.constant 0 : i32
    %c0_i32_1 = arith.constant 0 : i32
    return %c0_i32, %c0_i32_0 : i32, i32
  }
  func.func @transform_6(%arg0: i32) -> (i32, i32) {
    %c0_i32 = arith.constant 0 : i32
    %c0_i32_0 = arith.constant 0 : i32
    %c0_i32_1 = arith.constant 0 : i32
    return %c0_i32, %c0_i32_0 : i32, i32
  }
  func.func @transform_7(%arg0: i32) -> (i32, i32) {
    %c0_i32 = arith.constant 0 : i32
    %c0_i32_0 = arith.constant 0 : i32
    return %c0_i32, %arg0 : i32, i32
  }
}

</mosaic_0001>

<bundles_post_ra>
// kernel: tpu_custom_call.1
= control target key start
LH: loop header
LB: loop body
LE: loop exit
PB: predicated region body
PF: predicated region fallthrough
CT: control target
= control target key end

     0   :  { %s506_s0 = inlined_call_operand.vmem [shape: f32[32,128], index: 0, kind: input, shape index: {}]   ;;  %s507_s1 = inlined_call_operand.vmem [shape: f32[64,32], index: 1, kind: input, shape index: {}]   ;;  %s508_s2 = inlined_call_operand.vmem [shape: f32[64,1], index: 2, kind: input, shape index: {}]   ;;  %s509_s3 = inlined_call_operand.vmem [shape: f32[32,64], index: 3, kind: input, shape index: {}]   ;;  %s510_s4 = inlined_call_operand.vmem [shape: f32[32,1], index: 4, kind: input, shape index: {}]   ;;  %s511_s5 = inlined_call_operand.vmem [shape: f32[32,1], index: 5, kind: input, shape index: {}]   ;;  %s512_s6 = inlined_call_operand.<no memory space> [shape: f32[1,1], index: 6, kind: input, shape index: {}]   ;;  %s513_s7 = inlined_call_operand.hbm [shape: f32[1,128], index: 7, kind: output, shape index: {}]  }
   0x1   :  { %v12_v0 = vstv %s512_s6 }
   0x2   :  { %13 = vst [vmem:[#allocation2] sm:$0x1] %v12_v0 }
   0x3   :  { %v32_v1 = vld [vmem:[%s506_s0 + $0x18] sm:$0xff]  ;;  %v31_v2 = vld [vmem:[%s506_s0 + $0x10] sm:$0xff]  ;;  %v354_v3 = vmov 0   ;;  %v30_v5 = vld [vmem:[%s506_s0 + $0x8] sm:$0xff]  ;;  %vm89_vm0 = vcmask 261120  }
   0x4   :  { %311 = vmatpush.msra.mxu2 %v32_v1  ;;  %325 = vset.pattern.permute.xlu0 %v354_v3  ;;  %v48_v4 = vld [vmem:[%s508_s2 + $0x38] sm:$0xff]  ;;  %v46_v6 = vld [vmem:[%s508_s2 + $0x28] sm:$0xff]  ;;  %v29_v7 = vld [vmem:[%s506_s0] sm:$0xff] }
   0x5   :  { %86 = vperm.xlu0 %325, %v48_v4   ;;  %326 = vset.pattern.permute.xlu1 %v354_v3  ;;  %v36_v8 = vld [vmem:[%s507_s1 + $0x18] sm:$0xff] }
   0x6   :  { %312 = vmatpush.msra.mxu2 %v31_v2  ;;  %76 = vperm.xlu1 %326, %v46_v6  }
   0x7   :  { %126 = vmatpush.msra.mxu0 %v32_v1  ;;  %327 = vset.pattern.permute.xlu2 %v354_v3 }
   0x8   :  { %313 = vmatpush.msra.mxu2 %v30_v5 }
   0x9   :  { %127 = vmatpush.msra.mxu0 %v31_v2 }
   0xa   :  { %14 = vsyncpa [#allocation4], 0  ;;  %314 = vmatpush.msra.mxu2 %v29_v7  ;;  %v47_v9 = vld [vmem:[%s508_s2 + $0x30] sm:$0xff]  ;;  %v45_v10 = vld [vmem:[%s508_s2 + $0x20] sm:$0xff]  ;;  %vm191_vm1 = vcmask 523264  }
   0xb   :  { %302 = vmatmul.msk.f32.vlgmr.msra.gmra.mxu2 %vm89_vm0, %v36_v8  ;;  %128 = vmatpush.msra.mxu0 %v30_v5  ;;  %v33_v11 = vld [vmem:[%s507_s1] sm:$0xff]  ;;  %v44_v12 = vld [vmem:[%s508_s2 + $0x18] sm:$0xff]  ;;  %v42_v14 = vld [vmem:[%s508_s2 + $0x8] sm:$0xff] }
   0xc   :  { %66 = vperm.xlu2 %327, %v44_v12   ;;  %v37_v13 = vld [vmem:[%s507_s1 + $0x20] sm:$0xff]  ;;  %v34_v16 = vld [vmem:[%s507_s1 + $0x8] sm:$0xff]  ;;  %v43_v17 = vld [vmem:[%s508_s2 + $0x10] sm:$0xff] }
   0xd   :  { %81 = vperm.xlu0 %325, %v47_v9   ;;  %129 = vmatpush.msra.mxu0 %v29_v7  ;;  %v41_v15 = vld [vmem:[%s508_s2] sm:$0xff]  ;;  %v38_v18 = vld [vmem:[%s507_s1 + $0x28] sm:$0xff]  ;;  %v169_v20 = vld [vmem:[%s510_s4 + $0x10] sm:$0xff]  ;;  %s290_s2 = sshll.u32 %s513_s7, 4  ;;  %s291_s2 = int_to_ptr.hbm [resolvable:$true] %s290_s2 }
   0xe   :  { %71 = vperm.xlu1 %326, %v45_v10   ;;  %299 = vmatmul.msk.f32.vlgmr.msra.gmra.mxu0 %vm89_vm0, %v33_v11  ;;  %v168_v19 = vld [vmem:[%s510_s4 + $0x8] sm:$0xff]  ;;  %v35_v21 = vld [vmem:[%s507_s1 + $0x10] sm:$0xff]  ;;  %v167_v22 = vld [vmem:[%s510_s4] sm:$0xff] }
   0xf   :  { %v39_v23 = vld [vmem:[%s507_s1 + $0x30] sm:$0xff]  ;;  %v237_v24 = vld [vmem:[%s511_s5] sm:$0xff]  ;;  %v238_v25 = vld [vmem:[%s511_s5 + $0x8] sm:$0xff] }
  0x10   :  { %v170_v26 = vld [vmem:[%s510_s4 + $0x18] sm:$0xff]  ;;  %v241_v29 = vld [vmem:[#allocation2] sm:$0x1]  ;;  %v239_v30 = vld [vmem:[%s511_s5 + $0x10] sm:$0xff] }
  0x11   :  { %v40_v27 = vld [vmem:[%s507_s1 + $0x38] sm:$0xff]  ;;  %v163_v63 = vld [vmem:[%s509_s3] sm:$0xff]  ;;  %v164_v0 = vld [vmem:[%s509_s3 + $0x8] sm:$0xff] }
  0x12   :  { %v240_v28 = vld [vmem:[%s511_s5 + $0x18] sm:$0xff]  ;;  %v165_v1 = vld [vmem:[%s509_s3 + $0x10] sm:$0xff] }
  0x13   :  { %303 = vmatmul.msk.f32.gmra.mxu2 %vm89_vm0, %v37_v13  ;;  %v166_v2 = vld [vmem:[%s509_s3 + $0x18] sm:$0xff]  ;;  %s355_s3 = smov [#allocation3]  }
  0x14   :  { %61 = vperm.xlu2 %327, %v43_v17   ;;  %s288_s12 = sshll.u32 %s355_s3, 4  ;;  %s289_s12 = int_to_ptr.vmem [resolvable:$true] %s288_s12 }
  0x15   :  { %56 = vperm.xlu0 %325, %v42_v14  }
  0x16   :  { %51 = vperm.xlu1 %326, %v41_v15   ;;  %300 = vmatmul.msk.f32.gmra.mxu0 %vm89_vm0, %v34_v16 }
  0x1b   :  { %304 = vmatmul.msk.f32.gmra.mxu2 %vm89_vm0, %v38_v18 }
  0x1c   :  { %173 = vperm.xlu2 %327, %v167_v22  }
  0x1d   :  { %178 = vperm.xlu0 %325, %v168_v19  }
  0x1e   :  { %183 = vperm.xlu1 %326, %v169_v20   ;;  %301 = vmatmul.msk.f32.gmra.mxu0 %vm89_vm0, %v35_v21 }
  0x23   :  { %305 = vmatmul.msk.f32.gmra.mxu2 %vm89_vm0, %v39_v23 }
  0x24   :  { %188 = vperm.xlu2 %327, %v170_v26  }
  0x25   :  { %244 = vperm.xlu0 %325, %v237_v24  }
  0x26   :  { %249 = vperm.xlu1 %326, %v238_v25  }
  0x2b   :  { %306 = vmatmul.msk.f32.gmra.mxu2 %vm89_vm0, %v40_v27 }
  0x2c   :  { %254 = vperm.xlu2 %327, %v239_v30  }
  0x2d   :  { %259 = vperm.xlu0 %325, %v240_v28  }
  0x2e   :  { %277 = vperm.xlu1 %326, %v241_v29  }
  0x66   :  { %v67_v39 = vpop.permute.xlu2 %66 }
  0x6e   :  { %v62_v52 = vpop.permute.xlu2 %61 }
  0x76   :  { %v174_v3 = vpop.permute.xlu2 %173 }
  0x77   :  { %v87_v35 = vpop.permute.xlu0 %86 }
  0x78   :  { %v77_v36 = vpop.permute.xlu1 %76 }
  0x7e   :  { %v189_v7 = vpop.permute.xlu2 %188 }
  0x7f   :  { %v82_v40 = vpop.permute.xlu0 %81 }
  0x80   :  { %v72_v44 = vpop.permute.xlu1 %71 }
  0x86   :  { %v255_v19 = vpop.permute.xlu2 %254 }
  0x87   :  { %v57_v55 = vpop.permute.xlu0 %56 }
  0x88   :  { %v52_v58 = vpop.permute.xlu1 %51 }
  0x8b   :  { %v131_v34 = vpop.f32.mrf.mxu0 }
  0x8c   :  { %v132_v59 = vadd.f32 %v131_v34, %v52_v58 }
  0x8e   :  { %v140_v31 = vpop.f32.mrf.mxu2  ;;  %v155_v62 = vmax.f32 %v132_v59, 0.0 }
  0x8f   :  { %v141_v50 = vadd.f32 %v140_v31, %v67_v39  ;;  %v179_v4 = vpop.permute.xlu0 %178 }
  0x90   :  { %v184_v6 = vpop.permute.xlu1 %183 }
  0x91   :  { %v158_v56 = vmax.f32 %v141_v50, 0.0 }
  0x93   :  { %v134_v38 = vpop.f32.mrf.mxu0 }
  0x94   :  { %v135_v57 = vadd.f32 %v134_v38, %v57_v55 }
  0x96   :  { %v143_v32 = vpop.f32.mrf.mxu2  ;;  %v156_v61 = vmax.f32 %v135_v57, 0.0 }
  0x97   :  { %v144_v47 = vadd.f32 %v143_v32, %v72_v44  ;;  %v245_v13 = vpop.permute.xlu0 %244 }
  0x98   :  { %v250_v17 = vpop.permute.xlu1 %249 }
  0x99   :  { %v159_v53 = vmax.f32 %v144_v47, 0.0 }
  0x9b   :  { %v137_v49 = vpop.f32.mrf.mxu0 }
  0x9c   :  { %v138_v54 = vadd.f32 %v137_v49, %v62_v52 }
  0x9e   :  { %v146_v33 = vpop.f32.mrf.mxu2  ;;  %v157_v60 = vmax.f32 %v138_v54, 0.0 }
  0x9f   :  { %v147_v45 = vadd.f32 %v146_v33, %v77_v36  ;;  %v260_v26 = vpop.permute.xlu0 %259 }
  0xa0   :  { %v278_v34 = vpop.permute.xlu1 %277 }
  0xa1   :  { %v160_v51 = vmax.f32 %v147_v45, 0.0  ;;  %v280_v36 = vperm.slane %v278_v34, 0 }
  0xa6   :  { %v149_v37 = vpop.f32.mrf.mxu2 }
  0xa7   :  { %v150_v42 = vadd.f32 %v149_v37, %v82_v40 }
  0xa9   :  { %v161_v48 = vmax.f32 %v150_v42, 0.0 }
  0xae   :  { %v152_v41 = vpop.f32.mrf.mxu2 }
  0xaf   :  { %v153_v43 = vadd.f32 %v152_v41, %v87_v35 }
  0xb1   :  { %v162_v46 = vmax.f32 %v153_v43, 0.0 }
  0xb3   :  { %212 = vmatpush.msra.mxu1 %v162_v46  ;;  %315 = vmatpush.msra.mxu3 %v162_v46 }
  0xb5   :  { %213 = vmatpush.msra.mxu1 %v161_v48  ;;  %316 = vmatpush.msra.mxu3 %v161_v48 }
  0xb7   :  { %214 = vmatpush.msra.mxu1 %v160_v51  ;;  %317 = vmatpush.msra.mxu3 %v160_v51 }
  0xb9   :  { %215 = vmatpush.msra.mxu1 %v159_v53  ;;  %318 = vmatpush.msra.mxu3 %v159_v53 }
  0xbb   :  { %216 = vmatpush.msra.mxu1 %v158_v56  ;;  %319 = vmatpush.msra.mxu3 %v158_v56 }
  0xbd   :  { %217 = vmatpush.msra.mxu1 %v157_v60  ;;  %320 = vmatpush.msra.mxu3 %v157_v60 }
  0xbf   :  { %218 = vmatpush.msra.mxu1 %v156_v61  ;;  %321 = vmatpush.msra.mxu3 %v156_v61 }
  0xc1   :  { %219 = vmatpush.msra.mxu1 %v155_v62  ;;  %322 = vmatpush.msra.mxu3 %v155_v62 }
  0xc2   :  { %307 = vmatmul.msk.f32.vlgmr.msra.gmra.mxu1 %vm191_vm1, %v163_v63  ;;  %308 = vmatmul.msk.f32.vlgmr.msra.gmra.mxu3 %vm191_vm1, %v164_v0 }
  0xca   :  { %309 = vmatmul.msk.f32.gmra.mxu3 %vm191_vm1, %v165_v1 }
  0xd2   :  { %310 = vmatmul.msk.f32.gmra.mxu3 %vm191_vm1, %v166_v2 }
 0x13f   :  { %v221_v8 = vpop.f32.mrf.mxu1 }
 0x140   :  { %v222_v11 = vadd.f32 %v221_v8, %v174_v3 }
 0x142   :  { %v233_v15 = vmax.f32 %v222_v11, 0.0 }
 0x144   :  { %v262_v21 = vmul.f32 %v245_v13, %v233_v15 }
 0x145   :  { %v224_v5 = vpop.f32.mrf.mxu3 }
 0x146   :  { %v225_v9 = vadd.f32 %v224_v5, %v179_v4 }
 0x148   :  { %v234_v14 = vmax.f32 %v225_v9, 0.0 }
 0x14a   :  { %v263_v18 = vmul.f32 %v250_v17, %v234_v14 }
 0x14c   :  { %v266_v24 = vadd.f32 %v263_v18, %v262_v21 }
 0x14d   :  { %v227_v10 = vpop.f32.mrf.mxu3 }
 0x14e   :  { %v228_v12 = vadd.f32 %v227_v10, %v184_v6 }
 0x150   :  { %v235_v16 = vmax.f32 %v228_v12, 0.0 }
 0x152   :  { %v264_v22 = vmul.f32 %v255_v19, %v235_v16 }
 0x154   :  { %v267_v27 = vadd.f32 %v266_v24, %v264_v22 }
 0x155   :  { %v230_v20 = vpop.f32.mrf.mxu3 }
 0x156   :  { %v231_v23 = vadd.f32 %v230_v20, %v189_v7 }
 0x158   :  { %v236_v25 = vmax.f32 %v231_v23, 0.0 }
 0x15a   :  { %v265_v28 = vmul.f32 %v260_v26, %v236_v25 }
 0x15c   :  { %v268_v29 = vadd.f32 %v267_v27, %v265_v28 }
 0x15e   :  { %v269_v30 = vrot.slane %v268_v29, 4 }
 0x160   :  { %v270_v31 = vadd.f32 %v269_v30, %v268_v29 }
 0x162   :  { %v271_v32 = vrot.slane %v270_v31, 2 }
 0x164   :  { %v272_v33 = vadd.f32 %v271_v32, %v270_v31 }
 0x166   :  { %v273_v35 = vrot.slane %v272_v33, 1 }
 0x168   :  { %v274_v37 = vadd.f32 %v273_v35, %v272_v33 }
 0x16a   :  { %v281_v38 = vadd.f32 %v280_v36, %v274_v37 }
 0x16c   :  { %282 = vst [vmem:[#allocation3] sm:$0x1] %v281_v38 }
 0x16d   :  { %293 = dma.vmem_to_hbm [thread:$0]  %s289_s12, 16, %s291_s2, [#allocation4]  }
 0x16e   :  { %352 = dma.done.wait [#allocation4], 16  }
 0x16f   :  { %353 = vsyncadd [#allocation4], 4294967280 }
 0x170   :  { %298 = vsyncpa [#allocation4], 1 }

</bundles_post_ra>
